<compile_context>
chip_gen: v5e
topology: v5e:2x2
jax: 0.10.0
libtpu: 0.0.40
codegen_flags: <defaults>
</compile_context>

<pallas_src>
import jax
import jax.numpy as jnp
from jax import lax
from jax.experimental import pallas as pl
from jax.experimental.pallas import tpu as pltpu


# ----------------------------------------------------------------------------
# Kernels
# ----------------------------------------------------------------------------
def _linear_single_kernel(x_ref, w_ref, b_ref, o_ref):
    """Single-shot tile: full K in one block. x:(tm,K) w:(tn,K) b:(1,tn)."""
    x = x_ref[...]
    w = w_ref[...]
    if x.dtype != w.dtype:          # in-kernel cast (e.g. f32 x, bf16 weight)
        x = x.astype(w.dtype)
    acc = lax.dot_general(
        x, w,
        dimension_numbers=(((1,), (1,)), ((), ())),   # contract K with K
        preferred_element_type=jnp.float32,
    )
    o_ref[...] = (acc + b_ref[...]).astype(o_ref.dtype)


def _linear_ktiled_kernel(x_ref, w_ref, b_ref, o_ref, acc_ref):
    """K-tiled path: accumulate into VMEM f32 scratch, store once at the end."""
    k = pl.program_id(2)

    @pl.when(k == 0)
    def _():
        acc_ref[...] = jnp.zeros_like(acc_ref)

    x = x_ref[...]
    w = w_ref[...]
    if x.dtype != w.dtype:
        x = x.astype(w.dtype)
    acc_ref[...] += lax.dot_general(
        x, w,
        dimension_numbers=(((1,), (1,)), ((), ())),
        preferred_element_type=jnp.float32,
    )

    @pl.when(k == pl.num_programs(2) - 1)
    def _():
        o_ref[...] = (acc_ref[...] + b_ref[...]).astype(o_ref.dtype)


# ----------------------------------------------------------------------------
# Hardware / tiling helpers
# ----------------------------------------------------------------------------
def _chip_info():
    """(vmem_capacity_bytes, mxu_dim) for the local TPU generation."""
    vmem_cap = None
    try:
        vmem_cap = int(pltpu.get_tpu_info().vmem_capacity_bytes)
    except Exception:
        vmem_cap = None

    kind = ""
    try:
        kind = jax.devices()[0].device_kind.lower()
    except Exception:
        pass

    old_gen = any(t in kind for t in ("v2", "v3", "v4", "v5"))
    mxu = 128 if old_gen else 256          # v5e MXUs are 128x128; v6e/v7x 256x256

    if vmem_cap is None:
        if "v7" in kind:
            vmem_cap = 64 << 20
        elif any(t in kind for t in ("v5", "v6")):
            vmem_cap = 128 << 20
        else:
            vmem_cap = 64 << 20            # conservative default
    return vmem_cap, mxu


def _sublane_align(dtype):
    """Sublane packing multiple for the compute dtype."""
    return {4: 8, 2: 16, 1: 32}.get(jnp.dtype(dtype).itemsize, 8)


def _pick_tile(dim, align, cap):
    """Largest tile <= cap that equals `dim` or is an `align`-multiple divisor."""
    if dim <= cap:
        return dim                          # full-extent block is always legal
    t = (cap // align) * align
    while t >= align:
        if dim % t == 0:
            return t
        t -= align
    # TODO(synk): pad ragged large dims instead of rejecting them.
    raise ValueError(f"dim {dim} has no {align}-aligned divisor <= {cap}")


def prepare_weight(weight, compute_dtype=None):
    """One-time parameter prep (cache the result outside the per-call path)."""
    if compute_dtype is not None:
        return weight.astype(compute_dtype)
    return weight


# ----------------------------------------------------------------------------
# Forward wrapper
# ----------------------------------------------------------------------------
def mlp_forward(x, weight, bias, *, tm_cap=None, tn_cap=None, tk_cap=None):
    """x: (M, K), weight: (N, K) PyTorch layout, bias: (N,). Returns (M, N)."""
    M, K = x.shape
    N, K2 = weight.shape
    assert K == K2 and bias.shape == (N,)

    out_dtype = x.dtype
    vmem_cap, mxu = _chip_info()

    # Generation-aware default tile caps (overridable).
    if vmem_cap >= (128 << 20):
        dm, dn, dk = 512, 1024, 2048       # v5e / v6e: 128 MiB VMEM
    else:
        dm, dn, dk = 256, 512, 1024        # v7x: 64 MiB VMEM
    tm_cap = dm if tm_cap is None else tm_cap
    tn_cap = dn if tn_cap is None else tn_cap
    tk_cap = dk if tk_cap is None else tk_cap

    # Sublane alignment follows the narrower (compute) dtype.
    m_align = _sublane_align(weight.dtype if
                             jnp.dtype(weight.dtype).itemsize <
                             jnp.dtype(x.dtype).itemsize else x.dtype)
    tm = _pick_tile(M, m_align, tm_cap)

    # Lane alignment: prefer the MXU width (256 on v6e/v7x), fall back to 128.
    try:
        tn = _pick_tile(N, mxu, tn_cap)
    except ValueError:
        tn = _pick_tile(N, 128, tn_cap)
    tk = _pick_tile(K, 128, tk_cap)

    # Megacore (v7x has 2 TCs): keep >= 2 blocks on a parallel axis when the
    # problem is large enough to split cleanly.
    if (M // tm) * (N // tn) < 2:
        if N % 256 == 0 and N // 2 >= 128:
            tn = N // 2
        elif M % (2 * m_align) == 0 and M // 2 >= m_align:
            tm = M // 2

    Mt, Nt = M // tm, N // tn
    single_shot = (tk == K)
    Kt = 1 if single_shot else K // tk

    b2d = bias.reshape(1, N).astype(jnp.float32)

    # Grid order from operand HBM traffic: put the heavier operand's tile axis
    # outermost so it streams once (matters most in the single-shot path).
    x_isz = jnp.dtype(x.dtype).itemsize
    w_isz = jnp.dtype(weight.dtype).itemsize
    o_isz = jnp.dtype(out_dtype).itemsize
    bytes_m_outer = M * K * x_isz + Mt * (N * K * w_isz)   # x once, W re-read
    bytes_n_outer = N * K * w_isz + Nt * (M * K * x_isz)   # W once, x re-read
    n_outer = bytes_n_outer < bytes_m_outer

    # VMEM budget: double-buffered inputs + resident acc + output + margin,
    # bounded to ~3/4 of physical VMEM (headroom for compiler scratch).
    tk_eff = K if single_shot else tk
    need = (2 * (tm * tk_eff * x_isz + tn * tk_eff * w_isz + tn * 4)
            + 2 * tm * tn * o_isz + tm * tn * 4 + (2 << 20))
    vmem_limit = min(max(2 * int(need), 32 << 20), (vmem_cap * 3) // 4)

    scratch_shapes = ()
    if single_shot:
        kernel = _linear_single_kernel
        if n_outer:
            grid = (Nt, Mt)
            in_specs = [
                pl.BlockSpec((tm, K), lambda j, i: (i, 0)),   # x rows (re-read)
                pl.BlockSpec((tn, K), lambda j, i: (j, 0)),   # W rows (once/j)
                pl.BlockSpec((1, tn), lambda j, i: (0, j)),   # bias
            ]
            out_specs = pl.BlockSpec((tm, tn), lambda j, i: (i, j))
        else:
            grid = (Mt, Nt)
            in_specs = [
                pl.BlockSpec((tm, K), lambda i, j: (i, 0)),
                pl.BlockSpec((tn, K), lambda i, j: (j, 0)),
                pl.BlockSpec((1, tn), lambda i, j: (0, j)),
            ]
            out_specs = pl.BlockSpec((tm, tn), lambda i, j: (i, j))
        dims = ("parallel", "parallel")
    else:
        kernel = _linear_ktiled_kernel
        scratch_shapes = (pltpu.VMEM((tm, tn), jnp.float32),)
        if n_outer:
            grid = (Nt, Mt, Kt)
            in_specs = [
                pl.BlockSpec((tm, tk), lambda j, i, k: (i, k)),
                pl.BlockSpec((tn, tk), lambda j, i, k: (j, k)),
                pl.BlockSpec((1, tn), lambda j, i, k: (0, j)),
            ]
            out_specs = pl.BlockSpec((tm, tn), lambda j, i, k: (i, j))
        else:
            grid = (Mt, Nt, Kt)
            in_specs = [
                pl.BlockSpec((tm, tk), lambda i, j, k: (i, k)),
                pl.BlockSpec((tn, tk), lambda i, j, k: (j, k)),
                pl.BlockSpec((1, tn), lambda i, j, k: (0, j)),
            ]
            out_specs = pl.BlockSpec((tm, tn), lambda i, j, k: (i, j))
        dims = ("parallel", "parallel", "arbitrary")

    return pl.pallas_call(
        kernel,
        out_shape=jax.ShapeDtypeStruct((M, N), out_dtype),
        grid_spec=pltpu.PrefetchScalarGridSpec(
            num_scalar_prefetch=0,
            grid=grid,
            in_specs=in_specs,
            out_specs=out_specs,
            scratch_shapes=scratch_shapes,
        ),
        compiler_params=pltpu.CompilerParams(
            dimension_semantics=dims,
            vmem_limit_bytes=int(vmem_limit),
        ),
    )(x, weight, b2d)


if __name__ == "__main__":
    # Small shapes consistent with the module: MLP(target_size=128, input_size=256)
    batch, input_size, target_size = 8, 256, 128

    key = jax.random.PRNGKey(0)
    kx, kw, kb = jax.random.split(key, 3)

    # Deterministic synthetic params (PyTorch Linear-style uniform init bound)
    bound = 1.0 / (input_size ** 0.5)
    x = jax.random.normal(kx, (batch, input_size), dtype=jnp.float32)
    weight = jax.random.uniform(
        kw, (target_size, input_size), dtype=jnp.float32, minval=-bound, maxval=bound
    )
    bias = jax.random.uniform(
        kb, (target_size,), dtype=jnp.float32, minval=-bound, maxval=bound
    )

    ref = x @ weight.T + bias

    # 1) Single-shot f32 path (K fits one tile).
    out = jax.block_until_ready(mlp_forward(x, weight, bias))
    assert out.shape == (batch, target_size)
    assert jnp.allclose(out, ref, atol=1e-4, rtol=1e-4)

    # 2) K-tiled path (forced small tk) — exercises the scratch accumulator.
    out_kt = jax.block_until_ready(mlp_forward(x, weight, bias, tk_cap=128))
    assert jnp.allclose(out_kt, ref, atol=1e-4, rtol=1e-4)

    # 3) Pre-cast bf16 weight (one-time param prep); x tile cast in-kernel,
    #    f32 accumulation + f32 output preserved.
    weight_bf16 = prepare_weight(weight, jnp.bfloat16)
    out_bf16 = jax.block_until_ready(mlp_forward(x, weight_bf16, bias))
    assert out_bf16.dtype == jnp.float32
    assert jnp.allclose(out_bf16, ref, atol=5e-2, rtol=5e-2)

    print("KERNEL_OK")
</pallas_src>

<mosaic_0001>
module attributes {stable_mosaic.version = 11 : i64} {
  func.func @_linear_single_kernel(%arg0: i32, %arg1: i32, %arg2: memref<8x256xf32, #tpu.memory_space<vmem>>, %arg3: memref<128x256xf32, #tpu.memory_space<vmem>>, %arg4: memref<1x128xf32, #tpu.memory_space<vmem>>, %arg5: memref<8x128xf32, #tpu.memory_space<vmem>>) attributes {dimension_semantics = [#tpu.dimension_semantics<parallel>, #tpu.dimension_semantics<parallel>], iteration_bounds = array<i64: 1, 1>, scalar_prefetch = 0 : i64, scratch_operands = 0 : i64, tpu.core_type = #tpu.core_type<tc>, window_params = [{transform_indices = @transform_0, window_bounds = array<i64: 8, 256>}, {transform_indices = @transform_1, window_bounds = array<i64: 128, 256>}, {transform_indices = @transform_2, window_bounds = array<i64: 1, 128>}, {transform_indices = @transform_3, window_bounds = array<i64: 8, 128>}]} {
    %c0 = arith.constant 0 : index
    %c0_0 = arith.constant 0 : index
    %0 = vector.load %arg2[%c0, %c0_0] : memref<8x256xf32, #tpu.memory_space<vmem>>, vector<8x256xf32>
    %c0_1 = arith.constant 0 : index
    %c0_2 = arith.constant 0 : index
    %1 = vector.load %arg3[%c0_1, %c0_2] : memref<128x256xf32, #tpu.memory_space<vmem>>, vector<128x256xf32>
    %cst = arith.constant dense<0.000000e+00> : vector<8x128xf32>
    %2 = tpu.matmul %0, %1, %cst {dimension_numbers = #tpu.dot_dimension_numbers<[1], [1], [0], [0], [0, 0, 1, 0], [], []>} : vector<8x256xf32>, vector<128x256xf32>, vector<8x128xf32> -> vector<8x128xf32>
    %c0_3 = arith.constant 0 : index
    %c0_4 = arith.constant 0 : index
    %3 = vector.load %arg4[%c0_3, %c0_4] : memref<1x128xf32, #tpu.memory_space<vmem>>, vector<1x128xf32>
    %4 = vector.broadcast %3 : vector<1x128xf32> to vector<8x128xf32>
    %5 = arith.addf %2, %4 : vector<8x128xf32>
    %c0_5 = arith.constant 0 : index
    %c0_6 = arith.constant 0 : index
    %6 = vector.load %arg5[%c0_5, %c0_6] : memref<8x128xf32, #tpu.memory_space<vmem>>, vector<8x128xf32>
    tpu.vector_store %arg5[%c0_5, %c0_6], %5 {strides = array<i32>} : memref<8x128xf32, #tpu.memory_space<vmem>>, vector<8x128xf32>,
    return
  }
  func.func @transform_0(%arg0: i32, %arg1: i32) -> (i32, i32) {
    %c0_i32 = arith.constant 0 : i32
    %c0_i32_0 = arith.constant 0 : i32
    return %arg0, %c0_i32 : i32, i32
  }
  func.func @transform_1(%arg0: i32, %arg1: i32) -> (i32, i32) {
    %c0_i32 = arith.constant 0 : i32
    %c0_i32_0 = arith.constant 0 : i32
    return %arg1, %c0_i32 : i32, i32
  }
  func.func @transform_2(%arg0: i32, %arg1: i32) -> (i32, i32) {
    %c0_i32 = arith.constant 0 : i32
    %c0_i32_0 = arith.constant 0 : i32
    return %c0_i32, %arg1 : i32, i32
  }
  func.func @transform_3(%arg0: i32, %arg1: i32) -> (i32, i32) {
    %c0_i32 = arith.constant 0 : i32
    return %arg0, %arg1 : i32, i32
  }
}

</mosaic_0001>

<bundles_post_ra>
// kernel: tpu_custom_call.1
= control target key start
LH: loop header
LB: loop body
LE: loop exit
PB: predicated region body
PF: predicated region fallthrough
CT: control target
= control target key end

     0   :  { %8 = vsyncpa [#allocation3], 0  ;;  %s263_s0 = inlined_call_operand.hbm [shape: f32[8,256], index: 0, kind: input, shape index: {}]   ;;  %s264_s1 = inlined_call_operand.hbm [shape: f32[128,256], index: 1, kind: input, shape index: {}]   ;;  %s265_s2 = inlined_call_operand.vmem [shape: f32[1,128], index: 2, kind: input, shape index: {}]   ;;  %s266_s3 = inlined_call_operand.hbm [shape: f32[8,128], index: 3, kind: output, shape index: {}]  }
   0x1   :  { %9 = vsyncpa [#allocation6], 0 }
   0x2   :  { %10 = vsyncpa [#allocation4], 0  ;;  %s16_s14 = sshll.u32 %s263_s0, 4  ;;  %s226_s15 = smov [#allocation2]   ;;  %s17_s14 = int_to_ptr.hbm [resolvable:$true] %s16_s14 }
   0x3   :  { %s18_s16 = sshll.u32 %s226_s15, 4  ;;  %s26_s19 = sshll.u32 %s264_s1, 4  ;;  %s19_s16 = int_to_ptr.vmem [resolvable:$true] %s18_s16  ;;  %s27_s19 = int_to_ptr.hbm [resolvable:$true] %s26_s19 }
   0x4   :  { %21 = dma.hbm_to_vmem [thread:$0]  %s17_s14, 256, %s19_s16, [#allocation3]  }
   0x5   :  { %s227_s20 = smov [#allocation5]   ;;  %s228_s22 = smov 256  }
   0x6   :  { %s28_s21 = sshll.u32 %s227_s20, 4  ;;  %s229_s23 = smov 16   ;;  %s29_s21 = int_to_ptr.vmem [resolvable:$true] %s28_s21 }
   0x7   :  { %34 = dma.hbm_to_vmem [thread:$0]  %s27_s19, 4096, %s29_s21, [#allocation6], %s228_s22, %s228_s22, %s229_s23  }
   0x8   :  { %220 = dma.done.wait [#allocation3], 256  }
   0x9   :  { %221 = vsyncadd [#allocation3], 4294967040 }
   0xa   :  { %222 = dma.done.wait [#allocation6], 4096  }
   0xb   :  { %223 = vsyncadd [#allocation6], 4294963200  ;;  %v77_v0 = vld [vmem:[#allocation5 + $0xf0] sm:$0xff]  ;;  %v78_v1 = vld [vmem:[#allocation5 + $0xf8] sm:$0xff]  ;;  %s230_s24 = smov [#allocation7]   ;;  %s131_s28 = sshll.u32 %s266_s3, 4  ;;  %s132_s28 = int_to_ptr.hbm [resolvable:$true] %s131_s28 }
   0xc   :  { %83 = vmatpush.xpose.msra.mxu0 %v77_v0  ;;  %103 = vmatpush.xpose.msra.mxu1 %v78_v1  ;;  %v75_v2 = vld [vmem:[#allocation5 + $0xe0] sm:$0xff]  ;;  %v76_v3 = vld [vmem:[#allocation5 + $0xe8] sm:$0xff]  ;;  %v73_v4 = vld [vmem:[#allocation5 + $0xd0] sm:$0xff]  ;;  %s129_s25 = sshll.u32 %s230_s24, 4  ;;  %s130_s25 = int_to_ptr.vmem [resolvable:$true] %s129_s25 }
   0xd   :  { %v74_v5 = vld [vmem:[#allocation5 + $0xd8] sm:$0xff]  ;;  %v71_v6 = vld [vmem:[#allocation5 + $0xc0] sm:$0xff]  ;;  %v72_v7 = vld [vmem:[#allocation5 + $0xc8] sm:$0xff] }
   0xe   :  { %v69_v8 = vld [vmem:[#allocation5 + $0xb0] sm:$0xff]  ;;  %v70_v9 = vld [vmem:[#allocation5 + $0xb8] sm:$0xff]  ;;  %v67_v10 = vld [vmem:[#allocation5 + $0xa0] sm:$0xff] }
   0xf   :  { %v68_v11 = vld [vmem:[#allocation5 + $0xa8] sm:$0xff]  ;;  %v65_v12 = vld [vmem:[#allocation5 + $0x90] sm:$0xff]  ;;  %v66_v13 = vld [vmem:[#allocation5 + $0x98] sm:$0xff] }
  0x10   :  { %84 = vmatpush.xpose.msra.mxu0 %v75_v2  ;;  %104 = vmatpush.xpose.msra.mxu1 %v76_v3  ;;  %v63_v14 = vld [vmem:[#allocation5 + $0x80] sm:$0xff]  ;;  %v64_v15 = vld [vmem:[#allocation5 + $0x88] sm:$0xff]  ;;  %v61_v16 = vld [vmem:[#allocation5 + $0x70] sm:$0xff] }
  0x11   :  { %v62_v17 = vld [vmem:[#allocation5 + $0x78] sm:$0xff]  ;;  %v59_v18 = vld [vmem:[#allocation5 + $0x60] sm:$0xff]  ;;  %v60_v19 = vld [vmem:[#allocation5 + $0x68] sm:$0xff] }
  0x12   :  { %v57_v20 = vld [vmem:[#allocation5 + $0x50] sm:$0xff]  ;;  %v58_v21 = vld [vmem:[#allocation5 + $0x58] sm:$0xff]  ;;  %v55_v22 = vld [vmem:[#allocation5 + $0x40] sm:$0xff] }
  0x13   :  { %v56_v23 = vld [vmem:[#allocation5 + $0x48] sm:$0xff]  ;;  %v53_v24 = vld [vmem:[#allocation5 + $0x30] sm:$0xff]  ;;  %v54_v25 = vld [vmem:[#allocation5 + $0x38] sm:$0xff] }
  0x14   :  { %85 = vmatpush.xpose.msra.mxu0 %v73_v4  ;;  %105 = vmatpush.xpose.msra.mxu1 %v74_v5  ;;  %v51_v26 = vld [vmem:[#allocation5 + $0x20] sm:$0xff]  ;;  %v52_v27 = vld [vmem:[#allocation5 + $0x28] sm:$0xff]  ;;  %v49_v28 = vld [vmem:[#allocation5 + $0x10] sm:$0xff] }
  0x15   :  { %v50_v29 = vld [vmem:[#allocation5 + $0x18] sm:$0xff]  ;;  %v47_v30 = vld [vmem:[#allocation5] sm:$0xff]  ;;  %v48_v31 = vld [vmem:[#allocation5 + $0x8] sm:$0xff] }
  0x16   :  { %v45_v32 = vld [vmem:[#allocation2] sm:$0xff]  ;;  %v46_v33 = vld [vmem:[#allocation2 + $0x8] sm:$0xff] }
  0x17   :  { %v147_v34 = vld [vmem:[%s265_s2] ss:$0 sm:$0xff] }
  0x18   :  { %86 = vmatpush.xpose.msra.mxu0 %v71_v6  ;;  %106 = vmatpush.xpose.msra.mxu1 %v72_v7 }
  0x1c   :  { %87 = vmatpush.xpose.msra.mxu0 %v69_v8  ;;  %107 = vmatpush.xpose.msra.mxu1 %v70_v9 }
  0x20   :  { %88 = vmatpush.xpose.msra.mxu0 %v67_v10  ;;  %108 = vmatpush.xpose.msra.mxu1 %v68_v11 }
  0x24   :  { %89 = vmatpush.xpose.msra.mxu0 %v65_v12  ;;  %109 = vmatpush.xpose.msra.mxu1 %v66_v13 }
  0x28   :  { %90 = vmatpush.xpose.msra.mxu0 %v63_v14  ;;  %110 = vmatpush.xpose.msra.mxu1 %v64_v15 }
  0x2c   :  { %91 = vmatpush.xpose.msra.mxu0 %v61_v16  ;;  %111 = vmatpush.xpose.msra.mxu1 %v62_v17 }
  0x30   :  { %92 = vmatpush.xpose.msra.mxu0 %v59_v18  ;;  %112 = vmatpush.xpose.msra.mxu1 %v60_v19 }
  0x34   :  { %93 = vmatpush.xpose.msra.mxu0 %v57_v20  ;;  %113 = vmatpush.xpose.msra.mxu1 %v58_v21 }
  0x38   :  { %94 = vmatpush.xpose.msra.mxu0 %v55_v22  ;;  %114 = vmatpush.xpose.msra.mxu1 %v56_v23 }
  0x3c   :  { %95 = vmatpush.xpose.msra.mxu0 %v53_v24  ;;  %115 = vmatpush.xpose.msra.mxu1 %v54_v25 }
  0x40   :  { %96 = vmatpush.xpose.msra.mxu0 %v51_v26  ;;  %116 = vmatpush.xpose.msra.mxu1 %v52_v27 }
  0x44   :  { %97 = vmatpush.xpose.msra.mxu0 %v49_v28  ;;  %117 = vmatpush.xpose.msra.mxu1 %v50_v29 }
  0x48   :  { %98 = vmatpush.xpose.msra.mxu0 %v47_v30  ;;  %118 = vmatpush.xpose.msra.mxu1 %v48_v31 }
  0x4b   :  { %99 = vmatmul.f32.vlgmr.msra.gmra.mxu0 %v45_v32  ;;  %119 = vmatmul.f32.vlgmr.msra.gmra.mxu1 %v46_v33 }
  0xc8   :  { %v100_v35 = vpop.f32.mrf.mxu0  ;;  %v120_v36 = vpop.f32.mrf.mxu1 }
  0xc9   :  { %v101_v37 = vadd.f32 %v147_v34, %v100_v35 }
  0xcb   :  { %v121_v38 = vadd.f32 %v120_v36, %v101_v37 }
  0xcd   :  { %123 = vst [vmem:[#allocation7] sm:$0xff] %v121_v38 }
  0xce   :  { %134 = dma.vmem_to_hbm [thread:$0]  %s130_s25, 128, %s132_s28, [#allocation4]  }
  0xcf   :  { %224 = dma.done.wait [#allocation4], 128  }
  0xd0   :  { %225 = vsyncadd [#allocation4], 4294967168 }
  0xd1   :  { %139 = vsyncpa [#allocation3], 1 }
  0xd2   :  { %140 = vsyncpa [#allocation6], 1 }
  0xd3   :  { %141 = vsyncpa [#allocation4], 1 }

</bundles_post_ra>
